<compile_context>
chip_gen: v7x
topology: tpu7x:2x2x1
jax: 0.10.0
libtpu: 0.0.40
codegen_flags: <defaults>
</compile_context>

<pallas_src>
import jax
import jax.numpy as jnp
from jax.experimental import pallas as pl
from jax.experimental.pallas import tpu as pltpu

HIDDEN = 512
LANE = 128
MAX_TILE_N = 1024        # max batch rows per grid step
SUBLANE_BF16 = 16        # bf16 packs 16 rows per sublane vreg; keep tiles aligned
MIN_PARALLEL_GRID = 4    # below this, megacore 'parallel' only duplicates weight DMA


def _round_up(x, m):
    return ((x + m - 1) // m) * m


def _cdiv(a, b):
    return (a + b - 1) // b


def actor_kernel(x_ref, w1_ref, b1_ref, w2_ref, b2_ref, w3_ref, b3_ref, o_ref):
    """Fused 3-layer MLP: tanh(relu(relu(x@W1+b1)@W2+b2)@W3+b3).

    Matmuls run on the MXU in bf16 with f32 accumulation; bias adds / ReLU are
    f32 on the VPU, tanh on the EUP.  The PyTorch clamp(-1,1) after tanh is a
    no-op and is omitted.
    """
    x = x_ref[...]                                               # (T, in_pad) bf16

    # Layer 1: Linear(in_pad, 512) + ReLU
    h1 = jnp.dot(x, w1_ref[...], preferred_element_type=jnp.float32)
    h1 = jnp.maximum(h1 + b1_ref[...], 0.0)                      # (T, 512) f32

    # Layer 2: Linear(512, 512) + ReLU
    h2 = jnp.dot(h1.astype(jnp.bfloat16), w2_ref[...],
                 preferred_element_type=jnp.float32)
    h2 = jnp.maximum(h2 + b2_ref[...], 0.0)

    # Layer 3: Linear(512, out_pad) + Tanh
    o = jnp.dot(h2.astype(jnp.bfloat16), w3_ref[...],
                preferred_element_type=jnp.float32)
    o_ref[...] = jnp.tanh(o + b3_ref[...]).astype(o_ref.dtype)   # (T, out_pad)


def actor_forward(state, kparams, out_dim):
    """state: (N, in_dim) float32.  kparams: padded bf16 weights / f32 biases."""
    n, in_dim = state.shape
    in_pad = kparams["w1"].shape[0]
    hidden = kparams["w1"].shape[1]
    out_pad = kparams["w3"].shape[1]

    # Pad the feature dim of the state up to the padded weight input dim.
    if in_dim < in_pad:
        state = jnp.pad(state, ((0, 0), (0, in_pad - in_dim)))

    # Waste-minimizing batch tiling: pick the number of tiles first, then the
    # smallest 16-aligned tile that covers the batch with those tiles.
    num_tiles = _cdiv(n, MAX_TILE_N)
    tile_n = _round_up(_cdiv(n, num_tiles), SUBLANE_BF16)
    n_pad = tile_n * num_tiles
    if n_pad != n:
        state = jnp.pad(state, ((0, n_pad - n), (0, 0)))
    state = state.astype(jnp.bfloat16)            # halve x HBM traffic, no in-kernel cast
    grid = (num_tiles,)

    # Only shard the grid across TensorCores when there is enough work to
    # justify duplicating the resident weight DMA (v7x megacore).
    semantics = ("parallel",) if num_tiles >= MIN_PARALLEL_GRID else ("arbitrary",)

    # Weights / biases: constant block index -> DMA'd once, VMEM-resident.
    def const_spec(shape):
        return pl.BlockSpec(shape, lambda i: (0, 0))

    out = pl.pallas_call(
        actor_kernel,
        out_shape=jax.ShapeDtypeStruct((n_pad, out_pad), jnp.float32),
        grid_spec=pltpu.PrefetchScalarGridSpec(
            num_scalar_prefetch=0,
            grid=grid,
            in_specs=[
                pl.BlockSpec((tile_n, in_pad), lambda i: (i, 0)),   # x tile (bf16)
                const_spec((in_pad, hidden)),                       # W1 (bf16)
                const_spec((1, hidden)),                            # b1 (f32)
                const_spec((hidden, hidden)),                       # W2 (bf16)
                const_spec((1, hidden)),                            # b2 (f32)
                const_spec((hidden, out_pad)),                      # W3 (bf16)
                const_spec((1, out_pad)),                           # b3 (f32)
            ],
            out_specs=pl.BlockSpec((tile_n, out_pad), lambda i: (i, 0)),
        ),
        compiler_params=pltpu.CompilerParams(
            dimension_semantics=semantics,
        ),
    )(
        state,
        kparams["w1"], kparams["b1"],
        kparams["w2"], kparams["b2"],
        kparams["w3"], kparams["b3"],
    )
    return out[:n, :out_dim]


def init_params(key, in_dim, out_dim):
    """PyTorch-style uniform(-1/sqrt(fan_in), 1/sqrt(fan_in)) init.

    Returns:
      ref_params : f32, (in, out)-layout weights + (1, out) biases for the
                   pure-JAX reference.
      kparams    : kernel params — weights cast to bf16, with in_dim padded to
                   a 128-lane multiple and out_dim padded to a 128-lane
                   multiple (lane-dense output store); biases kept f32.
    """
    def linear(key, fan_in, fan_out):
        kw, kb = jax.random.split(key)
        bound = 1.0 / jnp.sqrt(jnp.float32(fan_in))
        w = jax.random.uniform(kw, (fan_in, fan_out), jnp.float32, -bound, bound)
        b = jax.random.uniform(kb, (1, fan_out), jnp.float32, -bound, bound)
        return w, b

    k1, k2, k3 = jax.random.split(key, 3)
    w1, b1 = linear(k1, in_dim, HIDDEN)
    w2, b2 = linear(k2, HIDDEN, HIDDEN)
    w3, b3 = linear(k3, HIDDEN, out_dim)
    ref_params = {"w1": w1, "b1": b1, "w2": w2, "b2": b2, "w3": w3, "b3": b3}

    in_pad = _round_up(in_dim, LANE)
    out_pad = _round_up(out_dim, LANE)

    w1_p = jnp.pad(w1, ((0, in_pad - in_dim), (0, 0))).astype(jnp.bfloat16)
    w3_p = jnp.pad(w3, ((0, 0), (0, out_pad - out_dim))).astype(jnp.bfloat16)
    b3_p = jnp.pad(b3, ((0, 0), (0, out_pad - out_dim)))
    kparams = {
        "w1": w1_p, "b1": b1,
        "w2": w2.astype(jnp.bfloat16), "b2": b2,
        "w3": w3_p, "b3": b3_p,
    }
    return ref_params, kparams


def actor_ref(state, params):
    """Pure-JAX f32 reference (matches the PyTorch module exactly)."""
    h = jnp.maximum(state @ params["w1"] + params["b1"], 0.0)
    h = jnp.maximum(h @ params["w2"] + params["b2"], 0.0)
    o = jnp.tanh(h @ params["w3"] + params["b3"])
    return jnp.clip(o, -1.0, 1.0)


if __name__ == "__main__":
    key = jax.random.PRNGKey(0)
    k_param, k_s1, k_s2, k_s3 = jax.random.split(key, 4)

    N, IN_DIM, OUT_DIM = 8, 32, 8   # small shapes: batch=8, in_dim=32, out_dim=8
    ref_params, kparams = init_params(k_param, IN_DIM, OUT_DIM)

    # bf16 weights + bf16 state vs. the f32 reference: loosened tolerance is an
    # intentional precision/throughput tradeoff.
    ATOL = 3e-2

    # 1) Small batch: single grid step, "arbitrary" semantics.
    state1 = jax.random.normal(k_s1, (N, IN_DIM), jnp.float32)
    out1 = jax.block_until_ready(actor_forward(state1, kparams, OUT_DIM))
    ref1 = actor_ref(state1, ref_params)
    assert out1.shape == (N, OUT_DIM)
    assert jnp.allclose(out1, ref1, atol=ATOL, rtol=0.0), float(
        jnp.max(jnp.abs(out1 - ref1)))

    # 2) Non-multiple batch: exercises waste-minimizing tile_n (one 304-row tile).
    N2 = 300
    state2 = jax.random.normal(k_s2, (N2, IN_DIM), jnp.float32)
    out2 = jax.block_until_ready(actor_forward(state2, kparams, OUT_DIM))
    ref2 = actor_ref(state2, ref_params)
    assert out2.shape == (N2, OUT_DIM)
    assert jnp.allclose(out2, ref2, atol=ATOL, rtol=0.0), float(
        jnp.max(jnp.abs(out2 - ref2)))

    # 3) Larger batch: multi-step grid (5 tiles) -> pipelining + "parallel"
    #    megacore path (still a tiny workload; runs in microseconds).
    N3 = 4133
    state3 = jax.random.normal(k_s3, (N3, IN_DIM), jnp.float32)
    out3 = jax.block_until_ready(actor_forward(state3, kparams, OUT_DIM))
    ref3 = actor_ref(state3, ref_params)
    assert out3.shape == (N3, OUT_DIM)
    assert jnp.allclose(out3, ref3, atol=ATOL, rtol=0.0), float(
        jnp.max(jnp.abs(out3 - ref3)))

    print("KERNEL_OK")
</pallas_src>

<mosaic_0001>
module attributes {stable_mosaic.version = 11 : i64} {
  func.func @actor_kernel(%arg0: i32, %arg1: memref<16x128xbf16, #tpu.memory_space<vmem>>, %arg2: memref<128x512xbf16, #tpu.memory_space<vmem>>, %arg3: memref<1x512xf32, #tpu.memory_space<vmem>>, %arg4: memref<512x512xbf16, #tpu.memory_space<vmem>>, %arg5: memref<1x512xf32, #tpu.memory_space<vmem>>, %arg6: memref<512x128xbf16, #tpu.memory_space<vmem>>, %arg7: memref<1x128xf32, #tpu.memory_space<vmem>>, %arg8: memref<16x128xf32, #tpu.memory_space<vmem>>) attributes {dimension_semantics = [#tpu.dimension_semantics<arbitrary>], iteration_bounds = array<i64: 1>, scalar_prefetch = 0 : i64, scratch_operands = 0 : i64, tpu.core_type = #tpu.core_type<tc>, window_params = [{transform_indices = @transform_0, window_bounds = array<i64: 16, 128>}, {pipeline_mode = #tpu.pipeline_mode<synchronous>, transform_indices = @transform_1, window_bounds = array<i64: 128, 512>}, {pipeline_mode = #tpu.pipeline_mode<synchronous>, transform_indices = @transform_2, window_bounds = array<i64: 1, 512>}, {pipeline_mode = #tpu.pipeline_mode<synchronous>, transform_indices = @transform_3, window_bounds = array<i64: 512, 512>}, {pipeline_mode = #tpu.pipeline_mode<synchronous>, transform_indices = @transform_4, window_bounds = array<i64: 1, 512>}, {pipeline_mode = #tpu.pipeline_mode<synchronous>, transform_indices = @transform_5, window_bounds = array<i64: 512, 128>}, {pipeline_mode = #tpu.pipeline_mode<synchronous>, transform_indices = @transform_6, window_bounds = array<i64: 1, 128>}, {transform_indices = @transform_7, window_bounds = array<i64: 16, 128>}]} {
    %c0 = arith.constant 0 : index
    %c0_0 = arith.constant 0 : index
    %0 = vector.load %arg1[%c0, %c0_0] : memref<16x128xbf16, #tpu.memory_space<vmem>>, vector<16x128xbf16>
    %c0_1 = arith.constant 0 : index
    %c0_2 = arith.constant 0 : index
    %1 = vector.load %arg2[%c0_1, %c0_2] : memref<128x512xbf16, #tpu.memory_space<vmem>>, vector<128x512xbf16>
    %cst = arith.constant dense<0.000000e+00> : vector<16x512xf32>
    %2 = tpu.matmul %0, %1, %cst {dimension_numbers = #tpu.dot_dimension_numbers<[1], [0], [0], [1], [0, 0, 1, 1], [], []>} : vector<16x128xbf16>, vector<128x512xbf16>, vector<16x512xf32> -> vector<16x512xf32>
    %c0_3 = arith.constant 0 : index
    %c0_4 = arith.constant 0 : index
    %3 = vector.load %arg3[%c0_3, %c0_4] : memref<1x512xf32, #tpu.memory_space<vmem>>, vector<1x512xf32>
    %4 = vector.broadcast %3 : vector<1x512xf32> to vector<16x512xf32>
    %5 = arith.addf %2, %4 : vector<16x512xf32>
    %cst_5 = arith.constant 0.000000e+00 : f32
    %6 = vector.broadcast %cst_5 : f32 to vector<16x512xf32>
    %7 = arith.maximumf %5, %6 : vector<16x512xf32>
    %8 = arith.truncf %7 : vector<16x512xf32> to vector<16x512xbf16>
    %c0_6 = arith.constant 0 : index
    %c0_7 = arith.constant 0 : index
    %9 = vector.load %arg4[%c0_6, %c0_7] : memref<512x512xbf16, #tpu.memory_space<vmem>>, vector<512x512xbf16>
    %cst_8 = arith.constant dense<0.000000e+00> : vector<16x512xf32>
    %10 = tpu.matmul %8, %9, %cst_8 {dimension_numbers = #tpu.dot_dimension_numbers<[1], [0], [0], [1], [0, 0, 1, 1], [], []>} : vector<16x512xbf16>, vector<512x512xbf16>, vector<16x512xf32> -> vector<16x512xf32>
    %c0_9 = arith.constant 0 : index
    %c0_10 = arith.constant 0 : index
    %11 = vector.load %arg5[%c0_9, %c0_10] : memref<1x512xf32, #tpu.memory_space<vmem>>, vector<1x512xf32>
    %12 = vector.broadcast %11 : vector<1x512xf32> to vector<16x512xf32>
    %13 = arith.addf %10, %12 : vector<16x512xf32>
    %cst_11 = arith.constant 0.000000e+00 : f32
    %14 = vector.broadcast %cst_11 : f32 to vector<16x512xf32>
    %15 = arith.maximumf %13, %14 : vector<16x512xf32>
    %16 = arith.truncf %15 : vector<16x512xf32> to vector<16x512xbf16>
    %c0_12 = arith.constant 0 : index
    %c0_13 = arith.constant 0 : index
    %17 = vector.load %arg6[%c0_12, %c0_13] : memref<512x128xbf16, #tpu.memory_space<vmem>>, vector<512x128xbf16>
    %cst_14 = arith.constant dense<0.000000e+00> : vector<16x128xf32>
    %18 = tpu.matmul %16, %17, %cst_14 {dimension_numbers = #tpu.dot_dimension_numbers<[1], [0], [0], [1], [0, 0, 1, 1], [], []>} : vector<16x512xbf16>, vector<512x128xbf16>, vector<16x128xf32> -> vector<16x128xf32>
    %c0_15 = arith.constant 0 : index
    %c0_16 = arith.constant 0 : index
    %19 = vector.load %arg7[%c0_15, %c0_16] : memref<1x128xf32, #tpu.memory_space<vmem>>, vector<1x128xf32>
    %20 = vector.broadcast %19 : vector<1x128xf32> to vector<16x128xf32>
    %21 = arith.addf %18, %20 : vector<16x128xf32>
    %22 = math.tanh %21 : vector<16x128xf32>
    %c0_17 = arith.constant 0 : index
    %c0_18 = arith.constant 0 : index
    %23 = vector.load %arg8[%c0_17, %c0_18] : memref<16x128xf32, #tpu.memory_space<vmem>>, vector<16x128xf32>
    tpu.vector_store %arg8[%c0_17, %c0_18], %22 {strides = array<i32>} : memref<16x128xf32, #tpu.memory_space<vmem>>, vector<16x128xf32>,
    return
  }
  func.func @transform_0(%arg0: i32) -> (i32, i32) {
    %c0_i32 = arith.constant 0 : i32
    %c0_i32_0 = arith.constant 0 : i32
    return %arg0, %c0_i32 : i32, i32
  }
  func.func @transform_1(%arg0: i32) -> (i32, i32) {
    %c0_i32 = arith.constant 0 : i32
    %c0_i32_0 = arith.constant 0 : i32
    %c0_i32_1 = arith.constant 0 : i32
    return %c0_i32, %c0_i32_0 : i32, i32
  }
  func.func @transform_2(%arg0: i32) -> (i32, i32) {
    %c0_i32 = arith.constant 0 : i32
    %c0_i32_0 = arith.constant 0 : i32
    %c0_i32_1 = arith.constant 0 : i32
    return %c0_i32, %c0_i32_0 : i32, i32
  }
  func.func @transform_3(%arg0: i32) -> (i32, i32) {
    %c0_i32 = arith.constant 0 : i32
    %c0_i32_0 = arith.constant 0 : i32
    %c0_i32_1 = arith.constant 0 : i32
    return %c0_i32, %c0_i32_0 : i32, i32
  }
  func.func @transform_4(%arg0: i32) -> (i32, i32) {
    %c0_i32 = arith.constant 0 : i32
    %c0_i32_0 = arith.constant 0 : i32
    %c0_i32_1 = arith.constant 0 : i32
    return %c0_i32, %c0_i32_0 : i32, i32
  }
  func.func @transform_5(%arg0: i32) -> (i32, i32) {
    %c0_i32 = arith.constant 0 : i32
    %c0_i32_0 = arith.constant 0 : i32
    %c0_i32_1 = arith.constant 0 : i32
    return %c0_i32, %c0_i32_0 : i32, i32
  }
  func.func @transform_6(%arg0: i32) -> (i32, i32) {
    %c0_i32 = arith.constant 0 : i32
    %c0_i32_0 = arith.constant 0 : i32
    %c0_i32_1 = arith.constant 0 : i32
    return %c0_i32, %c0_i32_0 : i32, i32
  }
  func.func @transform_7(%arg0: i32) -> (i32, i32) {
    %c0_i32 = arith.constant 0 : i32
    %c0_i32_0 = arith.constant 0 : i32
    return %arg0, %c0_i32 : i32, i32
  }
}

</mosaic_0001>

<bundles_post_ra>
// kernel: tpu_custom_call.1
= control target key start
LH: loop header
LB: loop body
LE: loop exit
PB: predicated region body
PF: predicated region fallthrough
CT: control target
= control target key end

     0   :  { %12 = vsyncpa [#allocation3], 0  ;;  %s2572_s0 = inlined_call_operand.hbm [shape: bf16[16,128], index: 0, kind: input, shape index: {}]   ;;  %s2573_s1 = inlined_call_operand.hbm [shape: bf16[128,512], index: 1, kind: input, shape index: {}]   ;;  %s2574_s2 = inlined_call_operand.vmem [shape: f32[1,512], index: 2, kind: input, shape index: {}]   ;;  %s2575_s3 = inlined_call_operand.hbm [shape: bf16[512,512], index: 3, kind: input, shape index: {}]   ;;  %s2576_s4 = inlined_call_operand.vmem [shape: f32[1,512], index: 4, kind: input, shape index: {}]   ;;  %s2577_s5 = inlined_call_operand.hbm [shape: bf16[512,128], index: 5, kind: input, shape index: {}]   ;;  %s2578_s6 = inlined_call_operand.vmem [shape: f32[1,128], index: 6, kind: input, shape index: {}]   ;;  %s2579_s7 = inlined_call_operand.hbm [shape: f32[16,128], index: 7, kind: output, shape index: {}]  }
   0x1   :  { %13 = vsyncpa [#allocation6], 0 }
   0x2   :  { %14 = vsyncpa [#allocation9], 0 }
   0x3   :  { %15 = vsyncpa [#allocation4], 0  ;;  %s2406_s24 = smov [#allocation5]   ;;  %s2288_s28 = scalar_lea.hbm %s2573_s1, 4096 }
   0x4   :  { %s33_s25 = sshll.u32 %s2406_s24, 4  ;;  %p2289_p0 = scmp.ne.s32.totalorder %s2573_s1, %s2288_s28  ;;  %s34_s25 = int_to_ptr.vmem [resolvable:$true] %s33_s25 }
   0x5   :  { %p2292_p1 = scmp.lt.u32.totalorder %s2288_s28, %s2573_s1 }
   0x7   :  { %p2294_p2 = pnand %p2292_p1, %p2289_p0 }
   0x9   :  { %2297 = shalt.err (!%p2294_p2)
}
   0xa   :  { %s2298_s10 = scalar_lea.vmem %s34_s25, 4096  ;;  %p2303_p4 = scmp.lt.s32.totalorder %s34_s25, %s34_s25 }
   0xb   :  { %p2299_p3 = scmp.ne.s32.totalorder %s34_s25, %s2298_s10  ;;  %p2304_p5 = scmp.lt.s32.totalorder %s2298_s10, %s2298_s10 }
   0xd   :  { %p2305_p6 = por %p2304_p5, %p2303_p4 }
   0xf   :  { %p2306_p7 = pnand %p2305_p6, %p2299_p3 }
  0x11   :  { %2309 = shalt.err (!%p2306_p7)
}
  0x12   :  { %s2407_s11 = smov 256   ;;  %s2408_s12 = smov 16  }
  0x13   :  { %39 = dma.hbm_to_vmem [thread:$0]  %s2573_s1, 4096, %s34_s25, [#allocation6], %s2407_s11, %s2407_s11, %s2408_s12  }
  0x14   :  { %s2409_s15 = smov [#allocation2]   ;;  %s2310_s19 = scalar_lea.hbm %s2572_s0, 128 }
  0x15   :  { %s21_s16 = sshll.u32 %s2409_s15, 4  ;;  %p2311_p8 = scmp.ne.s32.totalorder %s2572_s0, %s2310_s19  ;;  %s22_s16 = int_to_ptr.vmem [resolvable:$true] %s21_s16 }
  0x16   :  { %p2314_p9 = scmp.lt.u32.totalorder %s2310_s19, %s2572_s0 }
  0x18   :  { %p2316_p10 = pnand %p2314_p9, %p2311_p8 }
  0x1a   :  { %2319 = shalt.err (!%p2316_p10)
}
  0x1b   :  { %s2320_s24 = scalar_lea.vmem %s22_s16, 128  ;;  %p2325_p12 = scmp.lt.s32.totalorder %s22_s16, %s22_s16 }
  0x1c   :  { %p2321_p11 = scmp.ne.s32.totalorder %s22_s16, %s2320_s24  ;;  %p2326_p13 = scmp.lt.s32.totalorder %s2320_s24, %s2320_s24 }
  0x1e   :  { %p2327_p0 = por %p2326_p13, %p2325_p12 }
  0x20   :  { %p2328_p1 = pnand %p2327_p0, %p2321_p11 }
  0x22   :  { %2331 = shalt.err (!%p2328_p1)
}
  0x23   :  { %s2410_s1 = smov 64   ;;  %s2411_s25 = smov 4  }
  0x24   :  { %27 = dma.hbm_to_vmem [thread:$0]  %s2572_s0, 128, %s22_s16, [#allocation3], %s2410_s1, %s2410_s1, %s2411_s25  }
  0x25   :  { %s2412_s28 = smov [#allocation7]   ;;  %s2413_s30 = smov [#allocation8]  }
  0x26   :  { %s47_s29 = sshll.u32 %s2412_s28, 4  ;;  %s61_s8 = sshll.u32 %s2413_s30, 4  ;;  %s48_s29 = int_to_ptr.vmem [resolvable:$true] %s47_s29  ;;  %s2488_s8 = int_to_ptr.vmem [resolvable:$true] %s61_s8 }
  0x27   :  { %s2332_s13 = scalar_lea.hbm %s2575_s3, 16384 }
  0x28   :  { %p2333_p2 = scmp.ne.s32.totalorder %s2575_s3, %s2332_s13  ;;  %p2336_p3 = scmp.lt.u32.totalorder %s2332_s13, %s2575_s3 }
  0x2a   :  { %p2338_p4 = pnand %p2336_p3, %p2333_p2 }
  0x2c   :  { %2341 = shalt.err (!%p2338_p4)
}
  0x2d   :  { %s2342_s0 = scalar_lea.vmem %s48_s29, 16384  ;;  %p2347_p6 = scmp.lt.s32.totalorder %s48_s29, %s48_s29 }
  0x2e   :  { %p2343_p5 = scmp.ne.s32.totalorder %s48_s29, %s2342_s0  ;;  %p2348_p7 = scmp.lt.s32.totalorder %s2342_s0, %s2342_s0 }
  0x30   :  { %p2349_p8 = por %p2348_p7, %p2347_p6 }
  0x32   :  { %p2350_p9 = pnand %p2349_p8, %p2343_p5 }
  0x34   :  { %2353 = shalt.err (!%p2350_p9)
}
  0x35   :  { %53 = dma.hbm_to_vmem [thread:$0]  %s2575_s3, 16384, %s48_s29, [#allocation6], %s2407_s11, %s2407_s11, %s2408_s12  }
  0x36   :  { %s2354_s22 = scalar_lea.hbm %s2577_s5, 4096 }
  0x37   :  { %p2355_p10 = scmp.ne.s32.totalorder %s2577_s5, %s2354_s22  ;;  %p2358_p11 = scmp.lt.u32.totalorder %s2354_s22, %s2577_s5 }
  0x39   :  { %p2360_p12 = pnand %p2358_p11, %p2355_p10 }
  0x3b   :  { %2363 = shalt.err (!%p2360_p12)
}
  0x3c   :  { %s2364_s28 = scalar_lea.vmem %s2488_s8, 4096  ;;  %p2369_p0 = scmp.lt.s32.totalorder %s2488_s8, %s2488_s8 }
  0x3d   :  { %p2365_p13 = scmp.ne.s32.totalorder %s2488_s8, %s2364_s28  ;;  %p2370_p1 = scmp.lt.s32.totalorder %s2364_s28, %s2364_s28 }
  0x3f   :  { %p2371_p2 = por %p2370_p1, %p2369_p0 }
  0x41   :  { %p2372_p3 = pnand %p2371_p2, %p2365_p13 }
  0x43   :  { %2375 = shalt.err (!%p2372_p3)
}
  0x44   :  { %67 = dma.hbm_to_vmem [thread:$0]  %s2577_s5, 4096, %s2488_s8, [#allocation9], %s2410_s1, %s2410_s1, %s2411_s25  }
  0x45   :  { %2398 = dma.done.wait [#allocation3], 128  }
  0x46   :  { %2399 = vsyncadd [#allocation3], 4294967168 }
  0x47   :  { %2400 = dma.done.wait [#allocation6], 20480  }
  0x48   :  { %2401 = vsyncadd [#allocation6], 4294946816 }
  0x49   :  { %2402 = dma.done.wait [#allocation9], 4096  }
  0x4a   :  { %2403 = vsyncadd [#allocation9], 4294963200  ;;  %v2414_v0 = vmov 0   ;;  %v2011_v1 = vld [vmem:[#allocation5 + $0x4] ss:$16 sps:$4 sm:$0xff]   ;;  %v2035_v29 = vld [vmem:[#allocation2] sm:$0xff]  }
  0x4b   :  { %337 = vmatprep.mubr.bf16.mxu0 %v2414_v0  ;;  %380 = vmatprep.mubr.bf16.mxu1 %v2414_v0  ;;  %v2013_v2 = vld [vmem:[#allocation5] ss:$16 sps:$4 sm:$0xff]   ;;  %v2014_v3 = vld [vmem:[#allocation5 + $0x24] ss:$16 sps:$4 sm:$0xff]   ;;  %v2036_v10 = vld [vmem:[#allocation5 + $0xc] ss:$16 sps:$4 sm:$0xff]  }
  0x4c   :  { %305 = vmatprep.subr.bf16.mxu0 %v2011_v1  ;;  %v2016_v4 = vld [vmem:[#allocation5 + $0x20] ss:$16 sps:$4 sm:$0xff]   ;;  %v2017_v5 = vld [vmem:[#allocation5 + $0x44] ss:$16 sps:$4 sm:$0xff]   ;;  %v2038_v11 = vld [vmem:[#allocation5 + $0x8] ss:$16 sps:$4 sm:$0xff]   ;;  %348 = vmatprep.subr.bf16.mxu1 %v2036_v10 }
  0x4d   :  { %306 = vmatpush1.bf16.msra.mxu0 %v2013_v2  ;;  %v2019_v6 = vld [vmem:[#allocation5 + $0x40] ss:$16 sps:$4 sm:$0xff]   ;;  %v2020_v7 = vld [vmem:[#allocation5 + $0x64] ss:$16 sps:$4 sm:$0xff]   ;;  %v2039_v12 = vld [vmem:[#allocation5 + $0x2c] ss:$16 sps:$4 sm:$0xff]   ;;  %349 = vmatpush1.bf16.msra.mxu1 %v2038_v11 }
  0x4e   :  { %307 = vmatprep.subr.bf16.mxu0 %v2014_v3  ;;  %v2022_v8 = vld [vmem:[#allocation5 + $0x60] ss:$16 sps:$4 sm:$0xff]   ;;  %v2023_v9 = vld [vmem:[#allocation5 + $0x84] ss:$16 sps:$4 sm:$0xff]   ;;  %v2041_v14 = vld [vmem:[#allocation5 + $0x28] ss:$16 sps:$4 sm:$0xff]   ;;  %350 = vmatprep.subr.bf16.mxu1 %v2039_v12 }
  0x4f   :  { %v2025_v13 = vld [vmem:[#allocation5 + $0x80] ss:$16 sps:$4 sm:$0xff]   ;;  %v2026_v15 = vld [vmem:[#allocation5 + $0xa4] ss:$16 sps:$4 sm:$0xff]   ;;  %v2042_v16 = vld [vmem:[#allocation5 + $0x4c] ss:$16 sps:$4 sm:$0xff]  }
  0x50   :  { %v2028_v17 = vld [vmem:[#allocation5 + $0xa0] ss:$16 sps:$4 sm:$0xff]   ;;  %v2044_v18 = vld [vmem:[#allocation5 + $0x48] ss:$16 sps:$4 sm:$0xff]   ;;  %v2029_v19 = vld [vmem:[#allocation5 + $0xc4] ss:$16 sps:$4 sm:$0xff]  }
  0x51   :  { %308 = vmatpush1.bf16.msra.mxu0 %v2016_v4  ;;  %351 = vmatpush1.bf16.msra.mxu1 %v2041_v14  ;;  %v2045_v20 = vld [vmem:[#allocation5 + $0x6c] ss:$16 sps:$4 sm:$0xff]   ;;  %v2031_v21 = vld [vmem:[#allocation5 + $0xc0] ss:$16 sps:$4 sm:$0xff]   ;;  %v2047_v22 = vld [vmem:[#allocation5 + $0x68] ss:$16 sps:$4 sm:$0xff]  }
  0x52   :  { %309 = vmatprep.subr.bf16.mxu0 %v2017_v5  ;;  %352 = vmatprep.subr.bf16.mxu1 %v2042_v16  ;;  %v2032_v23 = vld [vmem:[#allocation5 + $0xe4] ss:$16 sps:$4 sm:$0xff]   ;;  %v2048_v24 = vld [vmem:[#allocation5 + $0x8c] ss:$16 sps:$4 sm:$0xff]   ;;  %v2034_v25 = vld [vmem:[#allocation5 + $0xe0] ss:$16 sps:$4 sm:$0xff]  }
  0x53   :  { %v2050_v26 = vld [vmem:[#allocation5 + $0x88] ss:$16 sps:$4 sm:$0xff]   ;;  %v2051_v27 = vld [vmem:[#allocation5 + $0xac] ss:$16 sps:$4 sm:$0xff]   ;;  %v2062_v28 = vld [vmem:[#allocation7 + $0x4] ss:$16 sps:$4 sm:$0xff]  }
  0x54   :  { %v2053_v30 = vld [vmem:[#allocation5 + $0xa8] ss:$16 sps:$4 sm:$0xff]   ;;  %v2060_v31 = vld [vmem:[#allocation7] ss:$16 sps:$4 sm:$0xff]   ;;  %v2054_v32 = vld [vmem:[#allocation5 + $0xcc] ss:$16 sps:$4 sm:$0xff]  }
  0x55   :  { %310 = vmatpush1.bf16.msra.mxu0 %v2019_v6  ;;  %353 = vmatpush1.bf16.msra.mxu1 %v2044_v18  ;;  %v2068_v33 = vld [vmem:[#allocation7 + $0x24] ss:$16 sps:$4 sm:$0xff]   ;;  %v2056_v34 = vld [vmem:[#allocation5 + $0xc8] ss:$16 sps:$4 sm:$0xff]   ;;  %v2066_v35 = vld [vmem:[#allocation7 + $0x20] ss:$16 sps:$4 sm:$0xff]  }
  0x56   :  { %311 = vmatprep.subr.bf16.mxu0 %v2020_v7  ;;  %354 = vmatprep.subr.bf16.mxu1 %v2045_v20  ;;  %v2057_v36 = vld [vmem:[#allocation5 + $0xec] ss:$16 sps:$4 sm:$0xff]   ;;  %v2074_v37 = vld [vmem:[#allocation7 + $0x44] ss:$16 sps:$4 sm:$0xff]   ;;  %v2059_v38 = vld [vmem:[#allocation5 + $0xe8] ss:$16 sps:$4 sm:$0xff]  }
  0x57   :  { %v2072_v39 = vld [vmem:[#allocation7 + $0x40] ss:$16 sps:$4 sm:$0xff]   ;;  %v2065_v40 = vld [vmem:[#allocation7 + $0xc] ss:$16 sps:$4 sm:$0xff]   ;;  %v2080_v41 = vld [vmem:[#allocation7 + $0x64] ss:$16 sps:$4 sm:$0xff]  }
  0x58   :  { %v2063_v42 = vld [vmem:[#allocation7 + $0x8] ss:$16 sps:$4 sm:$0xff]   ;;  %v2078_v43 = vld [vmem:[#allocation7 + $0x60] ss:$16 sps:$4 sm:$0xff]   ;;  %v2071_v44 = vld [vmem:[#allocation7 + $0x2c] ss:$16 sps:$4 sm:$0xff]  }
  0x59   :  { %312 = vmatpush1.bf16.msra.mxu0 %v2022_v8  ;;  %355 = vmatpush1.bf16.msra.mxu1 %v2047_v22  ;;  %v2086_v45 = vld [vmem:[#allocation7 + $0x84] ss:$16 sps:$4 sm:$0xff]   ;;  %v2069_v46 = vld [vmem:[#allocation7 + $0x28] ss:$16 sps:$4 sm:$0xff]   ;;  %v2084_v47 = vld [vmem:[#allocation7 + $0x80] ss:$16 sps:$4 sm:$0xff]  }
  0x5a   :  { %313 = vmatprep.subr.bf16.mxu0 %v2023_v9  ;;  %356 = vmatprep.subr.bf16.mxu1 %v2048_v24  ;;  %v2077_v48 = vld [vmem:[#allocation7 + $0x4c] ss:$16 sps:$4 sm:$0xff]   ;;  %v2092_v49 = vld [vmem:[#allocation7 + $0xa4] ss:$16 sps:$4 sm:$0xff]   ;;  %v2075_v50 = vld [vmem:[#allocation7 + $0x48] ss:$16 sps:$4 sm:$0xff]  }
  0x5b   :  { %v2090_v51 = vld [vmem:[#allocation7 + $0xa0] ss:$16 sps:$4 sm:$0xff]   ;;  %v2083_v52 = vld [vmem:[#allocation7 + $0x6c] ss:$16 sps:$4 sm:$0xff]   ;;  %v2098_v53 = vld [vmem:[#allocation7 + $0xc4] ss:$16 sps:$4 sm:$0xff]  }
  0x5c   :  { %v2081_v54 = vld [vmem:[#allocation7 + $0x68] ss:$16 sps:$4 sm:$0xff]   ;;  %v2096_v55 = vld [vmem:[#allocation7 + $0xc0] ss:$16 sps:$4 sm:$0xff]   ;;  %v2089_v56 = vld [vmem:[#allocation7 + $0x8c] ss:$16 sps:$4 sm:$0xff]  }
  0x5d   :  { %314 = vmatpush1.bf16.msra.mxu0 %v2025_v13  ;;  %357 = vmatpush1.bf16.msra.mxu1 %v2050_v26  ;;  %v2104_v57 = vld [vmem:[#allocation7 + $0xe4] ss:$16 sps:$4 sm:$0xff]   ;;  %v2087_v58 = vld [vmem:[#allocation7 + $0x88] ss:$16 sps:$4 sm:$0xff]   ;;  %v2095_v59 = vld [vmem:[#allocation7 + $0xac] ss:$16 sps:$4 sm:$0xff]  }
  0x5e   :  { %315 = vmatprep.subr.bf16.mxu0 %v2026_v15  ;;  %358 = vmatprep.subr.bf16.mxu1 %v2051_v27  ;;  %v2102_v60 = vld [vmem:[#allocation7 + $0xe0] ss:$16 sps:$4 sm:$0xff]   ;;  %v2110_v61 = vld [vmem:[#allocation7 + $0x104] ss:$16 sps:$4 sm:$0xff]   ;;  %v2093_v62 = vld [vmem:[#allocation7 + $0xa8] ss:$16 sps:$4 sm:$0xff]  }
  0x5f   :  { %v2108_v63 = vld [vmem:[#allocation7 + $0x100] ss:$16 sps:$4 sm:$0xff]   ;;  %v2101_v0 = vld [vmem:[#allocation7 + $0xcc] ss:$16 sps:$4 sm:$0xff]   ;;  %v2116_v1 = vld [vmem:[#allocation7 + $0x124] ss:$16 sps:$4 sm:$0xff]  }
  0x60   :  { %v2099_v2 = vld [vmem:[#allocation7 + $0xc8] ss:$16 sps:$4 sm:$0xff]   ;;  %v2114_v3 = vld [vmem:[#allocation7 + $0x120] ss:$16 sps:$4 sm:$0xff]   ;;  %v2107_v4 = vld [vmem:[#allocation7 + $0xec] ss:$16 sps:$4 sm:$0xff]  }
  0x61   :  { %316 = vmatpush1.bf16.msra.mxu0 %v2028_v17  ;;  %359 = vmatpush1.bf16.msra.mxu1 %v2053_v30  ;;  %v2122_v5 = vld [vmem:[#allocation7 + $0x144] ss:$16 sps:$4 sm:$0xff]   ;;  %v2105_v6 = vld [vmem:[#allocation7 + $0xe8] ss:$16 sps:$4 sm:$0xff]   ;;  %v2120_v7 = vld [vmem:[#allocation7 + $0x140] ss:$16 sps:$4 sm:$0xff]  }
  0x62   :  { %317 = vmatprep.subr.bf16.mxu0 %v2029_v19  ;;  %360 = vmatprep.subr.bf16.mxu1 %v2054_v32  ;;  %v2113_v8 = vld [vmem:[#allocation7 + $0x10c] ss:$16 sps:$4 sm:$0xff]   ;;  %v2128_v9 = vld [vmem:[#allocation7 + $0x164] ss:$16 sps:$4 sm:$0xff]   ;;  %v2111_v10 = vld [vmem:[#allocation7 + $0x108] ss:$16 sps:$4 sm:$0xff]  }
  0x63   :  { %v2126_v11 = vld [vmem:[#allocation7 + $0x160] ss:$16 sps:$4 sm:$0xff]   ;;  %v2119_v12 = vld [vmem:[#allocation7 + $0x12c] ss:$16 sps:$4 sm:$0xff]   ;;  %v2134_v13 = vld [vmem:[#allocation7 + $0x184] ss:$16 sps:$4 sm:$0xff]  }
  0x64   :  { %v2117_v14 = vld [vmem:[#allocation7 + $0x128] ss:$16 sps:$4 sm:$0xff]   ;;  %v2132_v15 = vld [vmem:[#allocation7 + $0x180] ss:$16 sps:$4 sm:$0xff]   ;;  %v2125_v16 = vld [vmem:[#allocation7 + $0x14c] ss:$16 sps:$4 sm:$0xff]  }
  0x65   :  { %318 = vmatpush1.bf16.msra.mxu0 %v2031_v21  ;;  %361 = vmatpush1.bf16.msra.mxu1 %v2056_v34  ;;  %v2140_v17 = vld [vmem:[#allocation7 + $0x1a4] ss:$16 sps:$4 sm:$0xff]   ;;  %v2123_v18 = vld [vmem:[#allocation7 + $0x148] ss:$16 sps:$4 sm:$0xff]   ;;  %v2138_v19 = vld [vmem:[#allocation7 + $0x1a0] ss:$16 sps:$4 sm:$0xff]  }
  0x66   :  { %319 = vmatprep.subr.bf16.mxu0 %v2032_v23  ;;  %362 = vmatprep.subr.bf16.mxu1 %v2057_v36  ;;  %v2131_v20 = vld [vmem:[#allocation7 + $0x16c] ss:$16 sps:$4 sm:$0xff]   ;;  %v2129_v21 = vld [vmem:[#allocation7 + $0x168] ss:$16 sps:$4 sm:$0xff]   ;;  %v2146_v26 = vld [vmem:[#allocation7 + $0x1c4] ss:$16 sps:$4 sm:$0xff]   ;;  %v119_v36 = vlaneseq }
  0x67   :  { %v2137_v22 = vld [vmem:[#allocation7 + $0x18c] ss:$16 sps:$4 sm:$0xff]   ;;  %v2135_v23 = vld [vmem:[#allocation7 + $0x188] ss:$16 sps:$4 sm:$0xff]   ;;  %v2152_v30 = vld [vmem:[#allocation7 + $0x1e4] ss:$16 sps:$4 sm:$0xff]  }
  0x68   :  { %v2143_v24 = vld [vmem:[#allocation7 + $0x1ac] ss:$16 sps:$4 sm:$0xff]   ;;  %v2150_v32 = vld [vmem:[#allocation7 + $0x1e0] ss:$16 sps:$4 sm:$0xff]   ;;  %v2158_v34 = vld [vmem:[#allocation7 + $0x204] ss:$16 sps:$4 sm:$0xff]  }
  0x69   :  { %320 = vmatpush1.bf16.msra.mxu0 %v2034_v25  ;;  %363 = vmatpush1.bf16.msra.mxu1 %v2059_v38  ;;  %v2141_v25 = vld [vmem:[#allocation7 + $0x1a8] ss:$16 sps:$4 sm:$0xff]   ;;  %v2149_v27 = vld [vmem:[#allocation7 + $0x1cc] ss:$16 sps:$4 sm:$0xff]   ;;  %s2415_s29 = smov [#allocation10]  }
  0x6a   :  { %1193 = vmatprep.subr.bf16.mxu0 %v2062_v28  ;;  %1279 = vmatprep.subr.bf16.mxu1 %v2065_v40  ;;  %v2144_v28 = vld [vmem:[#allocation7 + $0x1c0] ss:$16 sps:$4 sm:$0xff]   ;;  %s1731_s30 = sshll.u32 %s2415_s29, 4  ;;  %s1732_s30 = int_to_ptr.vmem [resolvable:$true] %s1731_s30 }
  0x6b   :  { %p2381_p5 = scmp.lt.s32.totalorder %s1732_s30, %s1732_s30 }
  0x6c   :  { %338 = vmatmul.mubr.bf16.vlgmr.msra.gmra.mrb[0].mxu0 %v2035_v29  ;;  %381 = vmatmul.mubr.bf16.vlgmr.msra.gmra.mrb[0].mxu1 %v2035_v29  ;;  %v2147_v29 = vld [vmem:[#allocation7 + $0x1c8] ss:$16 sps:$4 sm:$0xff]  }
  0x6d   :  { %1194 = vmatpush1.bf16.msra.mxu0 %v2060_v31  ;;  %1280 = vmatpush1.bf16.msra.mxu1 %v2063_v42  ;;  %v2155_v31 = vld [vmem:[#allocation7 + $0x1ec] ss:$16 sps:$4 sm:$0xff]  }
  0x6e   :  { %1195 = vmatprep.subr.bf16.mxu0 %v2068_v33  ;;  %1281 = vmatprep.subr.bf16.mxu1 %v2071_v44  ;;  %v2153_v33 = vld [vmem:[#allocation7 + $0x1e8] ss:$16 sps:$4 sm:$0xff]  }
  0x71   :  { %1196 = vmatpush1.bf16.msra.mxu0 %v2066_v35  ;;  %1282 = vmatpush1.bf16.msra.mxu1 %v2069_v46  ;;  %v2161_v35 = vld [vmem:[#allocation7 + $0x20c] ss:$16 sps:$4 sm:$0xff]  }
  0x72   :  { %1197 = vmatprep.subr.bf16.mxu0 %v2074_v37  ;;  %1283 = vmatprep.subr.bf16.mxu1 %v2077_v48  ;;  %v2525_v37 = vshrl.u32 %v119_v36, 7  ;;  %v2195_v36 = vld [vmem:[#allocation7 + $0x2c8] ss:$16 sps:$4 sm:$0xff]  }
  0x74   :  { %v121_v38 = vsub.s32 0, %v2525_v37  ;;  %v125_v40 = vsub.s32 1, %v2525_v37 }
  0x75   :  { %1198 = vmatpush1.bf16.msra.mxu0 %v2072_v39  ;;  %1284 = vmatpush1.bf16.msra.mxu1 %v2075_v50  ;;  %v117_v39 = vld [vmem:[%s2574_s2] sm:$0xf] }
  0x76   :  { %1199 = vmatprep.subr.bf16.mxu0 %v2080_v41  ;;  %1285 = vmatprep.subr.bf16.mxu1 %v2083_v52  ;;  %v122_v41 = vrot.slane %v117_v39, %v121_v38  ;;  %v126_v42 = vrot.slane %v117_v39, %v125_v40 }
  0x79   :  { %1200 = vmatpush1.bf16.msra.mxu0 %v2078_v43  ;;  %1286 = vmatpush1.bf16.msra.mxu1 %v2081_v54 }
  0x7a   :  { %1201 = vmatprep.subr.bf16.mxu0 %v2086_v45  ;;  %1287 = vmatprep.subr.bf16.mxu1 %v2089_v56  ;;  %v133_v56 = vsub.s32 3, %v2525_v37 }
  0x7d   :  { %1202 = vmatpush1.bf16.msra.mxu0 %v2084_v47  ;;  %1288 = vmatpush1.bf16.msra.mxu1 %v2087_v58 }
  0x7e   :  { %1203 = vmatprep.subr.bf16.mxu0 %v2092_v49  ;;  %1289 = vmatprep.subr.bf16.mxu1 %v2095_v59  ;;  %v2156_v59 = vld [vmem:[#allocation7 + $0x200] ss:$16 sps:$4 sm:$0xff]  }
  0x81   :  { %1204 = vmatpush1.bf16.msra.mxu0 %v2090_v51  ;;  %1290 = vmatpush1.bf16.msra.mxu1 %v2093_v62  ;;  %v2167_v62 = vld [vmem:[#allocation7 + $0x22c] ss:$16 sps:$4 sm:$0xff]  }
  0x82   :  { %1205 = vmatprep.subr.bf16.mxu0 %v2098_v53  ;;  %1291 = vmatprep.subr.bf16.mxu1 %v2101_v0  ;;  %v129_v53 = vsub.s32 2, %v2525_v37  ;;  %v134_v0 = vrot.slane %v117_v39, %v133_v56 }
  0x85   :  { %1206 = vmatpush1.bf16.msra.mxu0 %v2096_v55  ;;  %1292 = vmatpush1.bf16.msra.mxu1 %v2099_v2  ;;  %v2165_v2 = vld [vmem:[#allocation7 + $0x228] ss:$16 sps:$4 sm:$0xff]  }
  0x86   :  { %1207 = vmatprep.subr.bf16.mxu0 %v2104_v57  ;;  %1293 = vmatprep.subr.bf16.mxu1 %v2107_v4  ;;  %v2170_v4 = vld [vmem:[#allocation7 + $0x244] ss:$16 sps:$4 sm:$0xff]  }
  0x89   :  { %1208 = vmatpush1.bf16.msra.mxu0 %v2102_v60  ;;  %1294 = vmatpush1.bf16.msra.mxu1 %v2105_v6  ;;  %v2159_v60 = vld [vmem:[#allocation7 + $0x208] ss:$16 sps:$4 sm:$0xff]  }
  0x8a   :  { %1209 = vmatprep.subr.bf16.mxu0 %v2110_v61  ;;  %1295 = vmatprep.subr.bf16.mxu1 %v2113_v8  ;;  %v2164_v61 = vld [vmem:[#allocation7 + $0x224] ss:$16 sps:$4 sm:$0xff]  }
  0x8d   :  { %1210 = vmatpush1.bf16.msra.mxu0 %v2108_v63  ;;  %1296 = vmatpush1.bf16.msra.mxu1 %v2111_v10  ;;  %v130_v63 = vrot.slane %v117_v39, %v129_v53  ;;  %v2200_v39 = vld [vmem:[#allocation7 + $0x2e4] ss:$16 sps:$4 sm:$0xff]  }
  0x8e   :  { %1211 = vmatprep.subr.bf16.mxu0 %v2116_v1  ;;  %1297 = vmatprep.subr.bf16.mxu1 %v2119_v12  ;;  %v2162_v1 = vld [vmem:[#allocation7 + $0x220] ss:$16 sps:$4 sm:$0xff]  }
  0x91   :  { %1212 = vmatpush1.bf16.msra.mxu0 %v2114_v3  ;;  %1298 = vmatpush1.bf16.msra.mxu1 %v2117_v14  ;;  %v2171_v14 = vld [vmem:[#allocation7 + $0x248] ss:$16 sps:$4 sm:$0xff]  }
  0x92   :  { %1213 = vmatprep.subr.bf16.mxu0 %v2122_v5  ;;  %1299 = vmatprep.subr.bf16.mxu1 %v2125_v16  ;;  %v2173_v5 = vld [vmem:[#allocation7 + $0x24c] ss:$16 sps:$4 sm:$0xff]  }
  0x95   :  { %1214 = vmatpush1.bf16.msra.mxu0 %v2120_v7  ;;  %1300 = vmatpush1.bf16.msra.mxu1 %v2123_v18  ;;  %v2179_v18 = vld [vmem:[#allocation7 + $0x26c] ss:$16 sps:$4 sm:$0xff]  }
  0x96   :  { %1215 = vmatprep.subr.bf16.mxu0 %v2128_v9  ;;  %1301 = vmatprep.subr.bf16.mxu1 %v2131_v20 }
  0x99   :  { %1216 = vmatpush1.bf16.msra.mxu0 %v2126_v11  ;;  %1302 = vmatpush1.bf16.msra.mxu1 %v2129_v21 }
  0x9a   :  { %1217 = vmatprep.subr.bf16.mxu0 %v2134_v13  ;;  %1303 = vmatprep.subr.bf16.mxu1 %v2137_v22  ;;  %v2168_v13 = vld [vmem:[#allocation7 + $0x240] ss:$16 sps:$4 sm:$0xff]  }
  0x9b   :  { %v2174_v22 = vld [vmem:[#allocation7 + $0x260] ss:$16 sps:$4 sm:$0xff]  }
  0x9d   :  { %1218 = vmatpush1.bf16.msra.mxu0 %v2132_v15  ;;  %1304 = vmatpush1.bf16.msra.mxu1 %v2135_v23  ;;  %v2177_v23 = vld [vmem:[#allocation7 + $0x268] ss:$16 sps:$4 sm:$0xff]  }
  0x9e   :  { %1219 = vmatprep.subr.bf16.mxu0 %v2140_v17  ;;  %1305 = vmatprep.subr.bf16.mxu1 %v2143_v24  ;;  %v2176_v17 = vld [vmem:[#allocation7 + $0x264] ss:$16 sps:$4 sm:$0xff]  }
  0xa1   :  { %1220 = vmatpush1.bf16.msra.mxu0 %v2138_v19  ;;  %1306 = vmatpush1.bf16.msra.mxu1 %v2141_v25  ;;  %v2182_v25 = vld [vmem:[#allocation7 + $0x284] ss:$16 sps:$4 sm:$0xff]  }
  0xa2   :  { %1221 = vmatprep.subr.bf16.mxu0 %v2146_v26  ;;  %1307 = vmatprep.subr.bf16.mxu1 %v2149_v27  ;;  %v2185_v26 = vld [vmem:[#allocation7 + $0x28c] ss:$16 sps:$4 sm:$0xff]   ;;  %v2180_v27 = vld [vmem:[#allocation7 + $0x280] ss:$16 sps:$4 sm:$0xff]  }
  0xa5   :  { %1222 = vmatpush1.bf16.msra.mxu0 %v2144_v28  ;;  %1308 = vmatpush1.bf16.msra.mxu1 %v2147_v29  ;;  %v2183_v28 = vld [vmem:[#allocation7 + $0x288] ss:$16 sps:$4 sm:$0xff]   ;;  %v2188_v29 = vld [vmem:[#allocation7 + $0x2a4] ss:$16 sps:$4 sm:$0xff]  }
  0xa6   :  { %1223 = vmatprep.subr.bf16.mxu0 %v2152_v30  ;;  %1309 = vmatprep.subr.bf16.mxu1 %v2155_v31  ;;  %v2191_v30 = vld [vmem:[#allocation7 + $0x2ac] ss:$16 sps:$4 sm:$0xff]   ;;  %v2186_v31 = vld [vmem:[#allocation7 + $0x2a0] ss:$16 sps:$4 sm:$0xff]  }
  0xa9   :  { %1224 = vmatpush1.bf16.msra.mxu0 %v2150_v32  ;;  %1310 = vmatpush1.bf16.msra.mxu1 %v2153_v33  ;;  %v2189_v32 = vld [vmem:[#allocation7 + $0x2a8] ss:$16 sps:$4 sm:$0xff]   ;;  %v2194_v33 = vld [vmem:[#allocation7 + $0x2c4] ss:$16 sps:$4 sm:$0xff]  }
  0xaa   :  { %1236 = vmatprep.subr.bf16.mxu0 %v2158_v34  ;;  %1322 = vmatprep.subr.bf16.mxu1 %v2161_v35  ;;  %v2197_v34 = vld [vmem:[#allocation7 + $0x2cc] ss:$16 sps:$4 sm:$0xff]   ;;  %v2192_v35 = vld [vmem:[#allocation7 + $0x2c0] ss:$16 sps:$4 sm:$0xff]  }
 0x13f   :  { %v339_v43 = vpop.f32.mrb[0].mxu0  ;;  %v382_v3 = vpop.f32.mrb[0].mxu1 }
 0x140   :  { %v340_v44 = vadd.f32 %v339_v43, %v122_v41  ;;  %v341_v45 = vpop.f32.mrb[1].mxu0  ;;  %v383_v6 = vadd.f32 %v382_v3, %v130_v63  ;;  %v384_v7 = vpop.f32.mrb[1].mxu1  ;;  %v2201_v43 = vld [vmem:[#allocation7 + $0x2e8] ss:$16 sps:$4 sm:$0xff]   ;;  %v2239_v3 = vld [vmem:[#allocation7 + $0x3ac] ss:$16 sps:$4 sm:$0xff]  }
 0x141   :  { %v342_v46 = vadd.f32 %v341_v45, %v126_v42  ;;  %v343_v47 = vpop.f32.mrb[2].mxu0  ;;  %v385_v8 = vadd.f32 %v384_v7, %v134_v0  ;;  %v386_v9 = vpop.f32.mrb[2].mxu1  ;;  %v2209_v45 = vld [vmem:[#allocation7 + $0x30c] ss:$16 sps:$4 sm:$0xff]  }
 0x142   :  { %v344_v48 = vadd.f32 %v343_v47, %v122_v41  ;;  %v345_v49 = vpop.f32.mrb[3].mxu0  ;;  %v391_v51 = vmax.f32 %v340_v44, 0.0  ;;  %v393_v10 = vmax.f32 %v383_v6, 0.0  ;;  %v387_v11 = vadd.f32 %v386_v9, %v130_v63  ;;  %v388_v12 = vpop.f32.mrb[3].mxu1  ;;  %v2203_v41 = vld [vmem:[#allocation7 + $0x2ec] ss:$16 sps:$4 sm:$0xff]  }
 0x143   :  { %v346_v50 = vadd.f32 %v345_v49, %v126_v42  ;;  %v392_v54 = vmax.f32 %v342_v46, 0.0  ;;  %v394_v15 = vmax.f32 %v385_v8, 0.0  ;;  %v389_v16 = vadd.f32 %v388_v12, %v134_v0  ;;  %v2198_v42 = vld [vmem:[#allocation7 + $0x2e0] ss:$16 sps:$4 sm:$0xff]   ;;  %v2206_v44 = vld [vmem:[#allocation7 + $0x304] ss:$16 sps:$4 sm:$0xff]  }
 0x144   :  { %v395_v52 = vmax.f32 %v344_v48, 0.0  ;;  %v397_v19 = vmax.f32 %v387_v11, 0.0  ;;  %v2204_v46 = vld [vmem:[#allocation7 + $0x300] ss:$16 sps:$4 sm:$0xff]   ;;  %v2207_v47 = vld [vmem:[#allocation7 + $0x308] ss:$16 sps:$4 sm:$0xff]  }
 0x145   :  { %v396_v55 = vmax.f32 %v346_v50, 0.0  ;;  %v398_v20 = vmax.f32 %v389_v16, 0.0  ;;  %v2212_v48 = vld [vmem:[#allocation7 + $0x324] ss:$16 sps:$4 sm:$0xff]   ;;  %v2215_v49 = vld [vmem:[#allocation7 + $0x32c] ss:$16 sps:$4 sm:$0xff]  }
 0x146   :  { %v399_v57 = vpack.c.bf16 %v395_v52, %v391_v51  ;;  %v2542_v21 = vpack.c.bf16 %v397_v19, %v393_v10  ;;  %v2210_v50 = vld [vmem:[#allocation7 + $0x320] ss:$16 sps:$4 sm:$0xff]   ;;  %v2213_v51 = vld [vmem:[#allocation7 + $0x328] ss:$16 sps:$4 sm:$0xff]   ;;  %v2218_v52 = vld [vmem:[#allocation7 + $0x344] ss:$16 sps:$4 sm:$0xff]  }
 0x147   :  { %v400_v58 = vpack.c.bf16 %v396_v55, %v392_v54  ;;  %v402_v24 = vpack.c.bf16 %v398_v20, %v394_v15  ;;  %v2221_v54 = vld [vmem:[#allocation7 + $0x34c] ss:$16 sps:$4 sm:$0xff]   ;;  %v2216_v55 = vld [vmem:[#allocation7 + $0x340] ss:$16 sps:$4 sm:$0xff]   ;;  %v2242_v6 = vld [vmem:[#allocation7 + $0x3c4] ss:$16 sps:$4 sm:$0xff]  }
 0x148   :  { %v2233_v63 = vld [vmem:[#allocation7 + $0x38c] ss:$16 sps:$4 sm:$0xff]   ;;  %v2228_v0 = vld [vmem:[#allocation7 + $0x380] ss:$16 sps:$4 sm:$0xff]   ;;  %v2243_v9 = vld [vmem:[#allocation7 + $0x3c8] ss:$16 sps:$4 sm:$0xff]  }
 0x149   :  { %1225 = vmatprep.mubr.bf16.mxu0 %v400_v58  ;;  %1311 = vmatprep.mubr.bf16.mxu1 %v400_v58  ;;  %v2224_v58 = vld [vmem:[#allocation7 + $0x364] ss:$16 sps:$4 sm:$0xff]   ;;  %v2245_v7 = vld [vmem:[#allocation7 + $0x3cc] ss:$16 sps:$4 sm:$0xff]   ;;  %v2240_v8 = vld [vmem:[#allocation7 + $0x3c0] ss:$16 sps:$4 sm:$0xff]  }
 0x14a   :  { %1226 = vmatmul.mubr.bf16.vlgmr.msra.gmra.mrb[4].mxu0 %v399_v57  ;;  %1312 = vmatmul.mubr.bf16.vlgmr.msra.gmra.mrb[4].mxu1 %v399_v57  ;;  %v2219_v57 = vld [vmem:[#allocation7 + $0x348] ss:$16 sps:$4 sm:$0xff]   ;;  %v2248_v10 = vld [vmem:[#allocation7 + $0x3e4] ss:$16 sps:$4 sm:$0xff]   ;;  %v2251_v11 = vld [vmem:[#allocation7 + $0x3ec] ss:$16 sps:$4 sm:$0xff]  }
 0x14b   :  { %1237 = vmatpush1.bf16.msra.mxu0 %v2156_v59  ;;  %1323 = vmatpush1.bf16.msra.mxu1 %v2159_v60  ;;  %v2227_v59 = vld [vmem:[#allocation7 + $0x36c] ss:$16 sps:$4 sm:$0xff]   ;;  %v2222_v60 = vld [vmem:[#allocation7 + $0x360] ss:$16 sps:$4 sm:$0xff]  }
 0x14c   :  { %1238 = vmatprep.subr.bf16.mxu0 %v2164_v61  ;;  %1324 = vmatprep.subr.bf16.mxu1 %v2167_v62  ;;  %v2225_v61 = vld [vmem:[#allocation7 + $0x368] ss:$16 sps:$4 sm:$0xff]   ;;  %v2230_v62 = vld [vmem:[#allocation7 + $0x384] ss:$16 sps:$4 sm:$0xff]   ;;  %v2246_v12 = vld [vmem:[#allocation7 + $0x3e0] ss:$16 sps:$4 sm:$0xff]  }
 0x14d   :  { %1268 = vmatprep.mubr.bf16.mxu0 %v402_v24  ;;  %1354 = vmatprep.mubr.bf16.mxu1 %v402_v24  ;;  %v2253_v15 = vld [vmem:[#allocation8 + $0xc0] sm:$0xff]   ;;  %v2257_v19 = vld [vmem:[#allocation8 + $0xc8] sm:$0xff]   ;;  %v2261_v24 = vld [vmem:[#allocation8 + $0xd0] sm:$0xff]  }
 0x14e   :  { %v2254_v16 = vld [vmem:[#allocation8] sm:$0xff]   ;;  %v2258_v20 = vld [vmem:[#allocation8 + $0x8] sm:$0xff]  }
 0x14f   :  { %1239 = vmatpush1.bf16.msra.mxu0 %v2162_v1  ;;  %1325 = vmatpush1.bf16.msra.mxu1 %v2165_v2  ;;  %v2231_v1 = vld [vmem:[#allocation7 + $0x388] ss:$16 sps:$4 sm:$0xff]   ;;  %v2236_v2 = vld [vmem:[#allocation7 + $0x3a4] ss:$16 sps:$4 sm:$0xff]  }
 0x150   :  { %1240 = vmatprep.subr.bf16.mxu0 %v2170_v4  ;;  %1326 = vmatprep.subr.bf16.mxu1 %v2173_v5  ;;  %v2234_v4 = vld [vmem:[#allocation7 + $0x3a0] ss:$16 sps:$4 sm:$0xff]   ;;  %v2237_v5 = vld [vmem:[#allocation7 + $0x3a8] ss:$16 sps:$4 sm:$0xff]  }
 0x153   :  { %1241 = vmatpush1.bf16.msra.mxu0 %v2168_v13  ;;  %1327 = vmatpush1.bf16.msra.mxu1 %v2171_v14  ;;  %v2249_v13 = vld [vmem:[#allocation7 + $0x3e8] ss:$16 sps:$4 sm:$0xff]   ;;  %v2252_v14 = vld [vmem:[#allocation8 + $0x40] sm:$0xff]  }
 0x154   :  { %1242 = vmatprep.subr.bf16.mxu0 %v2176_v17  ;;  %1328 = vmatprep.subr.bf16.mxu1 %v2179_v18  ;;  %v2255_v17 = vld [vmem:[#allocation8 + $0x80] sm:$0xff]   ;;  %v2256_v18 = vld [vmem:[#allocation8 + $0x48] sm:$0xff]  }
 0x157   :  { %1243 = vmatpush1.bf16.msra.mxu0 %v2174_v22  ;;  %1329 = vmatpush1.bf16.msra.mxu1 %v2177_v23  ;;  %v2259_v22 = vld [vmem:[#allocation8 + $0x88] sm:$0xff]   ;;  %v2260_v23 = vld [vmem:[#allocation8 + $0x50] sm:$0xff]  }
 0x158   :  { %1244 = vmatprep.subr.bf16.mxu0 %v2182_v25  ;;  %1330 = vmatprep.subr.bf16.mxu1 %v2185_v26  ;;  %v2262_v25 = vld [vmem:[#allocation8 + $0x10] sm:$0xff]  }
 0x159   :  { %v2263_v26 = vld [vmem:[#allocation8 + $0x90] sm:$0xff]  }
 0x15b   :  { %1245 = vmatpush1.bf16.msra.mxu0 %v2180_v27  ;;  %1331 = vmatpush1.bf16.msra.mxu1 %v2183_v28  ;;  %v2264_v27 = vld [vmem:[#allocation8 + $0x58] sm:$0xff]  }
 0x15c   :  { %1246 = vmatprep.subr.bf16.mxu0 %v2188_v29  ;;  %1332 = vmatprep.subr.bf16.mxu1 %v2191_v30  ;;  %v2265_v28 = vld [vmem:[#allocation8 + $0xd8] sm:$0xff]   ;;  %v2268_v30 = vld [vmem:[#allocation8 + $0x60] sm:$0xff]  }
 0x15d   :  { %v2266_v29 = vld [vmem:[#allocation8 + $0x18] sm:$0xff]  }
 0x15f   :  { %1247 = vmatpush1.bf16.msra.mxu0 %v2186_v31  ;;  %1333 = vmatpush1.bf16.msra.mxu1 %v2189_v32  ;;  %v2269_v31 = vld [vmem:[#allocation8 + $0xe0] sm:$0xff]  }
 0x160   :  { %1248 = vmatprep.subr.bf16.mxu0 %v2194_v33  ;;  %1334 = vmatprep.subr.bf16.mxu1 %v2197_v34  ;;  %v2270_v32 = vld [vmem:[#allocation8 + $0x20] sm:$0xff]   ;;  %v2272_v34 = vld [vmem:[#allocation8 + $0x68] sm:$0xff]  }
 0x161   :  { %v2271_v33 = vld [vmem:[#allocation8 + $0xa0] sm:$0xff]  }
 0x163   :  { %1249 = vmatpush1.bf16.msra.mxu0 %v2192_v35  ;;  %1335 = vmatpush1.bf16.msra.mxu1 %v2195_v36  ;;  %v2273_v35 = vld [vmem:[#allocation8 + $0xe8] sm:$0xff]  }
 0x164   :  { %1250 = vmatprep.subr.bf16.mxu0 %v2200_v39  ;;  %1336 = vmatprep.subr.bf16.mxu1 %v2203_v41  ;;  %v2274_v36 = vld [vmem:[#allocation8 + $0x28] sm:$0xff]   ;;  %v2276_v41 = vld [vmem:[#allocation8 + $0x70] sm:$0xff]  }
 0x165   :  { %v2275_v39 = vld [vmem:[#allocation8 + $0xa8] sm:$0xff]  }
 0x167   :  { %1251 = vmatpush1.bf16.msra.mxu0 %v2198_v42  ;;  %1337 = vmatpush1.bf16.msra.mxu1 %v2201_v43  ;;  %v2277_v42 = vld [vmem:[#allocation8 + $0xf0] sm:$0xff]  }
 0x168   :  { %1252 = vmatprep.subr.bf16.mxu0 %v2206_v44  ;;  %1338 = vmatprep.subr.bf16.mxu1 %v2209_v45  ;;  %v2278_v43 = vld [vmem:[#allocation8 + $0x30] sm:$0xff]   ;;  %v2280_v45 = vld [vmem:[#allocation8 + $0x78] sm:$0xff]  }
 0x169   :  { %v2279_v44 = vld [vmem:[#allocation8 + $0xb0] sm:$0xff]  }
 0x16b   :  { %1253 = vmatpush1.bf16.msra.mxu0 %v2204_v46  ;;  %1339 = vmatpush1.bf16.msra.mxu1 %v2207_v47  ;;  %v2281_v46 = vld [vmem:[#allocation8 + $0xf8] sm:$0xff]  }
 0x16c   :  { %1254 = vmatprep.subr.bf16.mxu0 %v2212_v48  ;;  %1340 = vmatprep.subr.bf16.mxu1 %v2215_v49  ;;  %v2282_v47 = vld [vmem:[#allocation8 + $0x38] sm:$0xff]  }
 0x16d   :  { %v2283_v48 = vld [vmem:[#allocation8 + $0xb8] sm:$0xff]  }
 0x16e   :  { %v531_v49 = vld [vmem:[%s2576_s4] sm:$0xf] }
 0x16f   :  { %1255 = vmatpush1.bf16.msra.mxu0 %v2210_v50  ;;  %1341 = vmatpush1.bf16.msra.mxu1 %v2213_v51  ;;  %v536_v50 = vrot.slane %v531_v49, %v121_v38  ;;  %v544_v51 = vrot.slane %v531_v49, %v129_v53 }
 0x170   :  { %1256 = vmatprep.subr.bf16.mxu0 %v2218_v52  ;;  %1342 = vmatprep.subr.bf16.mxu1 %v2221_v54  ;;  %v540_v52 = vrot.slane %v531_v49, %v125_v40  ;;  %v548_v54 = vrot.slane %v531_v49, %v133_v56 }
 0x173   :  { %1257 = vmatpush1.bf16.msra.mxu0 %v2216_v55  ;;  %1343 = vmatpush1.bf16.msra.mxu1 %v2219_v57 }
 0x174   :  { %1258 = vmatprep.subr.bf16.mxu0 %v2224_v58  ;;  %1344 = vmatprep.subr.bf16.mxu1 %v2227_v59 }
 0x177   :  { %1259 = vmatpush1.bf16.msra.mxu0 %v2222_v60  ;;  %1345 = vmatpush1.bf16.msra.mxu1 %v2225_v61 }
 0x178   :  { %1260 = vmatprep.subr.bf16.mxu0 %v2230_v62  ;;  %1346 = vmatprep.subr.bf16.mxu1 %v2233_v63 }
 0x17b   :  { %1261 = vmatpush1.bf16.msra.mxu0 %v2228_v0  ;;  %1347 = vmatpush1.bf16.msra.mxu1 %v2231_v1 }
 0x17c   :  { %1262 = vmatprep.subr.bf16.mxu0 %v2236_v2  ;;  %1348 = vmatprep.subr.bf16.mxu1 %v2239_v3 }
 0x17f   :  { %1263 = vmatpush1.bf16.msra.mxu0 %v2234_v4  ;;  %1349 = vmatpush1.bf16.msra.mxu1 %v2237_v5 }
 0x180   :  { %1264 = vmatprep.subr.bf16.mxu0 %v2242_v6  ;;  %1350 = vmatprep.subr.bf16.mxu1 %v2245_v7 }
 0x183   :  { %1265 = vmatpush1.bf16.msra.mxu0 %v2240_v8  ;;  %1351 = vmatpush1.bf16.msra.mxu1 %v2243_v9 }
 0x184   :  { %1266 = vmatprep.subr.bf16.mxu0 %v2248_v10  ;;  %1352 = vmatprep.subr.bf16.mxu1 %v2251_v11 }
 0x187   :  { %1267 = vmatpush1.bf16.msra.mxu0 %v2246_v12  ;;  %1353 = vmatpush1.bf16.msra.mxu1 %v2249_v13 }
 0x188   :  { %1939 = vmatprep.subr.bf16.mxu0 %v2252_v14  ;;  %1961 = vmatprep.subr.bf16.mxu1 %v2253_v15 }
 0x18a   :  { %1269 = vmatmul.mubr.bf16.vlgmr.msra.gmra.mrb[4].mxu0 %v2542_v21  ;;  %1355 = vmatmul.mubr.bf16.vlgmr.msra.gmra.mrb[4].mxu1 %v2542_v21  ;;  %v2267_v21 = vld [vmem:[#allocation8 + $0x98] sm:$0xff]  }
 0x18b   :  { %1940 = vmatpush3.bf16.msra.mxu0 %v2254_v16  ;;  %1962 = vmatpush3.bf16.msra.mxu1 %v2255_v17  ;;  %v1906_v17 = vld [vmem:[%s2578_s6] ss:$0 sm:$0xff]  ;;  %s2376_s6 = scalar_lea.vmem %s1732_s30, 256 }
 0x18c   :  { %1941 = vmatprep.subr.bf16.mxu0 %v2256_v18  ;;  %1963 = vmatprep.subr.bf16.mxu1 %v2257_v19  ;;  %p2377_p4 = scmp.ne.s32.totalorder %s1732_s30, %s2376_s6  ;;  %p2382_p6 = scmp.lt.s32.totalorder %s2376_s6, %s2376_s6 }
 0x18e   :  { %p2383_p7 = por %p2382_p6, %p2381_p5 }
 0x18f   :  { %1942 = vmatpush3.bf16.msra.mxu0 %v2258_v20  ;;  %1964 = vmatpush3.bf16.msra.mxu1 %v2259_v22 }
 0x190   :  { %1943 = vmatprep.subr.bf16.mxu0 %v2260_v23  ;;  %1965 = vmatprep.subr.bf16.mxu1 %v2261_v24  ;;  %p2384_p8 = pnand %p2383_p7, %p2377_p4 }
 0x193   :  { %1944 = vmatpush3.bf16.msra.mxu0 %v2262_v25  ;;  %1966 = vmatpush3.bf16.msra.mxu1 %v2263_v26 }
 0x194   :  { %1945 = vmatprep.subr.bf16.mxu0 %v2264_v27  ;;  %1967 = vmatprep.subr.bf16.mxu1 %v2265_v28 }
 0x197   :  { %1946 = vmatpush3.bf16.msra.mxu0 %v2266_v29  ;;  %1968 = vmatpush3.bf16.msra.mxu1 %v2267_v21 }
 0x198   :  { %1947 = vmatprep.subr.bf16.mxu0 %v2268_v30  ;;  %1969 = vmatprep.subr.bf16.mxu1 %v2269_v31 }
 0x19b   :  { %1948 = vmatpush3.bf16.msra.mxu0 %v2270_v32  ;;  %1970 = vmatpush3.bf16.msra.mxu1 %v2271_v33 }
 0x19c   :  { %1949 = vmatprep.subr.bf16.mxu0 %v2272_v34  ;;  %1971 = vmatprep.subr.bf16.mxu1 %v2273_v35 }
 0x19f   :  { %1950 = vmatpush3.bf16.msra.mxu0 %v2274_v36  ;;  %1972 = vmatpush3.bf16.msra.mxu1 %v2275_v39 }
 0x1a0   :  { %1951 = vmatprep.subr.bf16.mxu0 %v2276_v41  ;;  %1973 = vmatprep.subr.bf16.mxu1 %v2277_v42 }
 0x1a3   :  { %1952 = vmatpush3.bf16.msra.mxu0 %v2278_v43  ;;  %1974 = vmatpush3.bf16.msra.mxu1 %v2279_v44 }
 0x1a4   :  { %1953 = vmatprep.subr.bf16.mxu0 %v2280_v45  ;;  %1975 = vmatprep.subr.bf16.mxu1 %v2281_v46 }
 0x1a7   :  { %1954 = vmatpush3.bf16.msra.mxu0 %v2282_v47  ;;  %1976 = vmatpush3.bf16.msra.mxu1 %v2283_v48 }
 0x25d   :  { %v1270_v55 = vpop.f32.mrb[4].mxu0  ;;  %v1356_v57 = vpop.f32.mrb[4].mxu1 }
 0x25e   :  { %v1983_v58 = vadd.f32 %v1270_v55, %v536_v50  ;;  %v1987_v59 = vadd.f32 %v1356_v57, %v544_v51  ;;  %v1272_v60 = vpop.f32.mrb[5].mxu0  ;;  %v1358_v61 = vpop.f32.mrb[5].mxu1 }
 0x25f   :  { %v1984_v62 = vadd.f32 %v1272_v60, %v540_v52  ;;  %v1988_v63 = vadd.f32 %v1358_v61, %v548_v54  ;;  %v1274_v0 = vpop.f32.mrb[6].mxu0  ;;  %v1360_v1 = vpop.f32.mrb[6].mxu1 }
 0x260   :  { %v1985_v38 = vadd.f32 %v1274_v0, %v536_v50  ;;  %v1989_v2 = vadd.f32 %v1360_v1, %v544_v51  ;;  %v1276_v3 = vpop.f32.mrb[7].mxu0  ;;  %v1362_v53 = vpop.f32.mrb[7].mxu1  ;;  %v1365_v40 = vmax.f32 %v1983_v58, 0.0  ;;  %v1367_v6 = vmax.f32 %v1987_v59, 0.0 }
 0x261   :  { %v1986_v4 = vadd.f32 %v1276_v3, %v540_v52  ;;  %v1990_v5 = vadd.f32 %v1362_v53, %v548_v54  ;;  %v1366_v7 = vmax.f32 %v1984_v62, 0.0  ;;  %v1368_v8 = vmax.f32 %v1988_v63, 0.0 }
 0x262   :  { %v1369_v37 = vmax.f32 %v1985_v38, 0.0  ;;  %v1371_v56 = vmax.f32 %v1989_v2, 0.0 }
 0x263   :  { %v1370_v9 = vmax.f32 %v1986_v4, 0.0  ;;  %v1372_v10 = vmax.f32 %v1990_v5, 0.0 }
 0x264   :  { %v1373_v11 = vpack.c.bf16 %v1369_v37, %v1365_v40  ;;  %v1375_v12 = vpack.c.bf16 %v1371_v56, %v1367_v6 }
 0x265   :  { %v1374_v13 = vpack.c.bf16 %v1370_v9, %v1366_v7  ;;  %v1376_v14 = vpack.c.bf16 %v1372_v10, %v1368_v8 }
 0x267   :  { %1672 = vmatprep.mubr.bf16.mxu0 %v1374_v13  ;;  %1713 = vmatprep.mubr.bf16.mxu1 %v1376_v14 }
 0x268   :  { %1673 = vmatmul.mubr.bf16.vlgmr.msra.gmra.mrb[8].mxu0 %v1373_v11  ;;  %1714 = vmatmul.mubr.bf16.vlgmr.msra.gmra.mrb[8].mxu1 %v1375_v12 }
 0x33b   :  { %v1955_v15 = vpop.f32.mrb[8].mxu0  ;;  %v1977_v16 = vpop.f32.mrb[8].mxu1 }
 0x33c   :  { %v1956_v18 = vpop.f32.mrb[9].mxu0  ;;  %v1978_v19 = vpop.f32.mrb[9].mxu1 }
 0x33d   :  { %v1957_v20 = vadd.f32 %v1956_v18, %v1955_v15  ;;  %v1979_v22 = vadd.f32 %v1978_v19, %v1977_v16  ;;  %v1958_v23 = vpop.f32.mrb[10].mxu0  ;;  %v1980_v24 = vpop.f32.mrb[10].mxu1 }
 0x33e   :  { %v1959_v25 = vpop.f32.mrb[11].mxu0  ;;  %v1981_v26 = vpop.f32.mrb[11].mxu1 }
 0x33f   :  { %v1675_v27 = vadd.f32 %v1957_v20, %v1906_v17  ;;  %v1960_v28 = vadd.f32 %v1959_v25, %v1958_v23  ;;  %v1982_v29 = vadd.f32 %v1981_v26, %v1980_v24 }
 0x341   :  { %v1716_v21 = vadd.f32 %v1979_v22, %v1675_v27  ;;  %v1678_v30 = vadd.f32 %v1960_v28, %v1906_v17 }
 0x343   :  { %2284 = vtanh.f32 %v1716_v21  ;;  %v1719_v31 = vadd.f32 %v1982_v29, %v1678_v30 }
 0x345   :  { %2286 = vtanh.f32 %v1719_v31 }
 0x34d   :  { %v2285_v32 = vpop.eup %2284 }
 0x34e   :  { %1724 = vst [vmem:[#allocation10] sm:$0xff] %v2285_v32 }
 0x34f   :  { %v2287_v33 = vpop.eup %2286 }
 0x350   :  { %1725 = vst [vmem:[#allocation10 + $0x8] sm:$0xff] %v2287_v33 }
 0x351   :  { %2387 = shalt.err (!%p2384_p8)
}
 0x352   :  { %s2388_s10 = scalar_lea.hbm %s2579_s7, 256 }
 0x353   :  { %p2389_p9 = scmp.ne.s32.totalorder %s2579_s7, %s2388_s10  ;;  %p2392_p10 = scmp.lt.u32.totalorder %s2388_s10, %s2579_s7 }
 0x355   :  { %p2394_p11 = pnand %p2392_p10, %p2389_p9 }
 0x357   :  { %2397 = shalt.err (!%p2394_p11)
}
 0x358   :  { %s2416_s18 = smov 128   ;;  %s2417_s0 = smov 8  }
 0x359   :  { %1737 = dma.vmem_to_hbm [thread:$0]  %s1732_s30, 256, %s2579_s7, [#allocation4], %s2416_s18, %s2416_s18, %s2417_s0  }
 0x35a   :  { %2404 = dma.done.wait [#allocation4], 256  }
 0x35b   :  { %2405 = vsyncadd [#allocation4], 4294967040 }
 0x35c   :  { %1741 = vsyncpa [#allocation3], 1 }
 0x35d   :  { %1742 = vsyncpa [#allocation6], 1 }
 0x35e   :  { %1743 = vsyncpa [#allocation9], 1 }
 0x35f   :  { %1744 = vsyncpa [#allocation4], 1 }

</bundles_post_ra>
